<compile_context>
chip_gen: v7x
topology: tpu7x:2x2x1
jax: 0.10.0
libtpu: 0.0.40
codegen_flags: <defaults>
</compile_context>

<pallas_src>
import enum
import math

import numpy as np
import jax
import jax.numpy as jnp
from jax.experimental import pallas as pl
from jax.experimental.pallas import tpu as pltpu


# ----------------------------- module setup (glue) -----------------------------

class Method(enum.Enum):
    TOP = enum.auto()
    BOT = enum.auto()
    LOW = enum.auto()


def get_freq_indices(method: Method, num_freq: int):
    assert num_freq in [1, 2, 4, 8, 16, 32]
    if method == Method.TOP:
        all_indices_x = [0, 0, 6, 0, 0, 1, 1, 4, 5, 1, 3, 0, 0, 0, 3, 2,
                         4, 6, 3, 5, 5, 2, 6, 5, 5, 3, 3, 4, 2, 2, 6, 1]
        all_indices_y = [0, 1, 0, 5, 2, 0, 2, 0, 0, 6, 0, 4, 6, 3, 5, 2,
                         6, 3, 3, 3, 5, 1, 1, 2, 4, 2, 1, 1, 3, 0, 5, 3]
    elif method == Method.BOT:
        all_indices_x = [0, 0, 1, 1, 0, 2, 2, 1, 2, 0, 3, 4, 0, 1, 3, 0,
                         1, 2, 3, 4, 5, 0, 1, 2, 3, 4, 5, 6, 1, 2, 3, 4]
        all_indices_y = [0, 1, 0, 1, 2, 0, 1, 2, 2, 3, 0, 0, 4, 3, 1, 5,
                         4, 3, 2, 1, 0, 6, 5, 4, 3, 2, 1, 0, 6, 5, 4, 3]
    elif method == Method.LOW:
        all_indices_x = [6, 1, 3, 3, 2, 4, 1, 2, 4, 4, 5, 1, 4, 6, 2, 5,
                         6, 1, 6, 2, 2, 4, 3, 3, 5, 5, 6, 2, 5, 5, 3, 6]
        all_indices_y = [6, 4, 4, 6, 6, 3, 1, 4, 4, 5, 6, 5, 2, 2, 5, 1,
                         4, 3, 5, 0, 3, 1, 1, 2, 4, 2, 1, 1, 5, 3, 3, 3]
    else:
        raise NotImplementedError(f'Method {method} not implemented')
    return all_indices_x[:num_freq], all_indices_y[:num_freq]


def _build_filter(pos, freq, max_pos):
    result = math.cos(math.pi * freq * (pos + 0.5) / max_pos) / math.sqrt(max_pos)
    if freq == 0:
        return result
    return result * math.sqrt(2)


def get_dct_filter(tile_size_x, tile_size_y, mapper_x, mapper_y, channel):
    """DCT filter buffer, shape (channel, tile_size_x, tile_size_y)."""
    dct_filter = np.zeros((channel, tile_size_x, tile_size_y), dtype=np.float32)
    c_part = channel // len(mapper_x)
    for i, (u_x, v_y) in enumerate(zip(mapper_x, mapper_y)):
        for t_x in range(tile_size_x):
            for t_y in range(tile_size_y):
                dct_filter[i * c_part:(i + 1) * c_part, t_x, t_y] = (
                    _build_filter(t_x, u_x, tile_size_x)
                    * _build_filter(t_y, v_y, tile_size_y))
    return jnp.asarray(dct_filter)


def _adaptive_pool_matrix(in_h, in_w, out_h, out_w):
    """(out_h*out_w, in_h*in_w) matrix P such that pooled.flat = P @ x.flat,
    matching torch.nn.functional.adaptive_avg_pool2d (non-divisible case
    included)."""
    P = np.zeros((out_h * out_w, in_h * in_w), dtype=np.float64)
    for oh in range(out_h):
        h0 = (oh * in_h) // out_h
        h1 = -((-(oh + 1) * in_h) // out_h)            # ceil division
        for ow in range(out_w):
            w0 = (ow * in_w) // out_w
            w1 = -((-(ow + 1) * in_w) // out_w)
            inv = 1.0 / ((h1 - h0) * (w1 - w0))
            for ih in range(h0, h1):
                for iw in range(w0, w1):
                    P[oh * out_w + ow, ih * in_w + iw] = inv
    return P


# --------------------------------- Pallas kernels ---------------------------------

def _se_fc(y, w1_t, w2_t):
    """Squeeze-excitation FC.  y: (Bt, C); w1_t: (C, Cr); w2_t: (Cr, C).
    Uses the MXU at realistic channel counts, the VPU only for tiny C."""
    c = y.shape[-1]
    if c >= 128:
        h1 = jnp.dot(y, w1_t, preferred_element_type=jnp.float32)          # (Bt, Cr)
        h1 = jnp.maximum(h1, 0.0)
        h2 = jnp.dot(h1, w2_t, preferred_element_type=jnp.float32)         # (Bt, C)
    else:
        h1 = jnp.sum(y[:, :, None] * w1_t[None, :, :], axis=1)             # (Bt, Cr)
        h1 = jnp.maximum(h1, 0.0)
        h2 = jnp.sum(h1[:, :, None] * w2_t[None, :, :], axis=1)            # (Bt, C)
    return jax.nn.sigmoid(h2)                                              # stable sigmoid


def _msa_kernel_c_sublane(x_ref, dct_ref, w1_ref, w2_ref, o_ref):
    # Layout: channels on sublanes, flattened spatial (HW) on lanes.
    # x_ref  : (Bt, C, HW)   dct_ref: (C, HW)   w1_ref: (C, Cr)   w2_ref: (Cr, C)
    x = x_ref[...]
    dct = dct_ref[...]
    # Spectral "pooling": the adaptive avg-pool is folded into dct, so x is
    # read exactly once and no pooled intermediate exists.
    y = jnp.sum(x * dct[None, :, :], axis=-1)                              # (Bt, C)
    z = _se_fc(y, w1_ref[...], w2_ref[...])                                # (Bt, C)
    o_ref[...] = (x * z[:, :, None]).astype(o_ref.dtype)


def _msa_kernel_c_lane(x_ref, dct_ref, w1_ref, w2_ref, o_ref):
    # Channel-last layout: channels on lanes (C % 128 == 0), HW on sublanes.
    # Used when HW is not a multiple of 128 so the output store stays
    # lane-dense (unmasked vst).
    # x_ref  : (Bt, HW, C)   dct_ref: (HW, C)   w1_ref: (C, Cr)   w2_ref: (Cr, C)
    x = x_ref[...]
    dct = dct_ref[...]
    y = jnp.sum(x * dct[None, :, :], axis=1)                               # (Bt, C)
    z = _se_fc(y, w1_ref[...], w2_ref[...])                                # (Bt, C)
    o_ref[...] = (x * z[:, None, :]).astype(o_ref.dtype)


# --------------------------------- host wrapper ---------------------------------

def _tpu_vmem_params():
    """(target_block_bytes, vmem_limit_cap) chosen per TPU generation."""
    vmem_cap = None
    try:
        info = pltpu.get_tpu_info()
        vmem_cap = getattr(info, "vmem_capacity_bytes", None)
    except Exception:
        vmem_cap = None
    if vmem_cap is None:
        vmem_cap = 64 << 20          # be conservative (assume v7x-like 64 MiB)
    if vmem_cap >= (100 << 20):      # v5e / v6e: 128 MiB physical VMEM
        return 12 << 20, 80 << 20
    else:                            # v7x: 64 MiB physical, leave headroom
        return 6 << 20, 48 << 20


def multi_spectral_attention(x, dct_weight, w1, w2, dct_h, dct_w):
    """x: (N, C, H, W) float32. Returns (N, C, H, W)."""
    n, c, h, w = x.shape
    cr = w1.shape[0]
    hw = h * w
    itemsize = x.dtype.itemsize

    # --- host-side (init-time) work: fold the adaptive avg pool into the DCT
    # filter.  Pooling is linear, so dct_folded = dct_flat @ P.
    dct_np = np.asarray(dct_weight, dtype=np.float32).reshape(c, dct_h * dct_w)
    if (h, w) == (dct_h, dct_w):
        dct_folded = dct_np
    else:
        P = _adaptive_pool_matrix(h, w, dct_h, dct_w)
        dct_folded = (dct_np.astype(np.float64) @ P).astype(np.float32)    # (C, HW)

    # FC weights, pre-transposed on the host so the kernel's MXU path has no
    # in-kernel transpose:  w1_t (C, Cr),  w2_t (Cr, C).
    w1_t = jnp.asarray(np.asarray(w1, dtype=np.float32).T)
    w2_t = jnp.asarray(np.asarray(w2, dtype=np.float32).T)

    # --- layout choice: keep the output store lane-dense.
    #   * HW % 128 == 0 -> channels on sublanes, HW on lanes (no plumbing).
    #   * HW % 128 != 0 and C % 128 == 0 -> channel-last (N, HW, C);
    #     wrapper-side transpose is layout plumbing, the in-kernel store is
    #     an unmasked vst over C.
    channels_last = (hw % 128 != 0) and (c % 128 == 0)
    # TODO(synk): when both HW and C are misaligned to 128 we fall back to the
    # sublane layout with masked partial stores.

    # --- batch tiling: pick b_tile from the byte target only (no divisibility
    # requirement; Pallas masks the ragged last block), and cap it so the grid
    # has >= 2 steps (both v7x TensorCores stream on the 'parallel' axis).
    target_block_bytes, vmem_cap = _tpu_vmem_params()
    per_batch_bytes = c * hw * itemsize
    b_tile = max(1, min(n, target_block_bytes // per_batch_bytes))
    if n >= 2:
        b_tile = min(b_tile, pl.cdiv(n, 2))
    grid = (pl.cdiv(n, b_tile),)
    # TODO(synk): if a single batch element ever exceeds the VMEM budget
    # (needs C*H*W >~ 3M elements, beyond real FcaNet stages), the SE FC mixes
    # all channels so a channel-tiled grid would require a two-phase
    # (accumulate-y then scale) design; not needed for FcaNet shapes.

    # --- explicit VMEM budget: double-buffered x + out, the (x*dct)
    # elementwise temporary, the folded DCT constant, and the fc weights.
    block_elems = b_tile * c * hw
    block_bytes = (2 * block_elems * itemsize        # x (double buffered)
                   + 2 * block_elems * itemsize      # out (double buffered)
                   + block_elems * 4                 # x*dct product temporary
                   + 2 * c * hw * 4                  # folded DCT filter
                   + 2 * 4 * (cr * c + c * cr))      # fc weights
    vmem_limit = int(min(vmem_cap, max(32 << 20, 2 * block_bytes)))

    # Advisory cost: x read once + output written once; DCT filter and fc
    # weights charged exactly once (their BlockSpecs return the same block
    # every step, so Pallas skips the refetch).
    cost = pl.CostEstimate(
        flops=3 * n * c * hw + 4 * n * c * cr,
        transcendentals=n * c,
        bytes_accessed=2 * n * c * hw * itemsize
                       + c * hw * 4
                       + 4 * (cr * c + c * cr))

    if channels_last:
        # Layout plumbing: (N, C, H, W) -> (N, HW, C).
        x_in = jnp.transpose(x.reshape(n, c, hw), (0, 2, 1))
        dct_in = jnp.asarray(np.ascontiguousarray(dct_folded.T))           # (HW, C)
        kernel = _msa_kernel_c_lane
        x_spec = pl.BlockSpec((b_tile, hw, c), lambda i: (i, 0, 0))
        dct_spec = pl.BlockSpec((hw, c), lambda i: (0, 0))
        out_shape = jax.ShapeDtypeStruct((n, hw, c), x.dtype)
    else:
        x_in = x.reshape(n, c, hw)
        dct_in = jnp.asarray(dct_folded)                                    # (C, HW)
        kernel = _msa_kernel_c_sublane
        x_spec = pl.BlockSpec((b_tile, c, hw), lambda i: (i, 0, 0))
        dct_spec = pl.BlockSpec((c, hw), lambda i: (0, 0))
        out_shape = jax.ShapeDtypeStruct((n, c, hw), x.dtype)

    # TODO(synk): if the caller can donate x, input_output_aliases={0: 0}
    # would reuse its HBM buffer for the output (same bandwidth, half the
    # footprint); not done here because the demo reuses x afterwards.
    out = pl.pallas_call(
        kernel,
        out_shape=out_shape,
        grid=grid,
        in_specs=[
            x_spec,                                          # x
            dct_spec,                                        # folded DCT
            pl.BlockSpec((c, cr), lambda i: (0, 0)),         # fc1 weight^T
            pl.BlockSpec((cr, c), lambda i: (0, 0)),         # fc2 weight^T
        ],
        out_specs=x_spec,
        compiler_params=pltpu.CompilerParams(
            dimension_semantics=("parallel",),
            vmem_limit_bytes=vmem_limit),
        cost_estimate=cost,
    )(x_in, dct_in, w1_t, w2_t)

    if channels_last:
        out = jnp.transpose(out, (0, 2, 1))
    return out.reshape(n, c, h, w)


# ------------------------------------ reference ------------------------------------

def adaptive_avg_pool2d_ref(x, out_h, out_w):
    """Independent reference for torch.nn.functional.adaptive_avg_pool2d
    (handles the non-divisible case)."""
    xn = np.asarray(x, dtype=np.float64)
    n, c, h, w = xn.shape
    out = np.zeros((n, c, out_h, out_w), dtype=np.float64)
    for oh in range(out_h):
        h0 = (oh * h) // out_h
        h1 = -((-(oh + 1) * h) // out_h)
        for ow in range(out_w):
            w0 = (ow * w) // out_w
            w1 = -((-(ow + 1) * w) // out_w)
            out[:, :, oh, ow] = xn[:, :, h0:h1, w0:w1].mean(axis=(2, 3))
    return jnp.asarray(out.astype(np.float32))


def reference(x, dct_weight, w1, w2, dct_h, dct_w):
    n, c, h, w = x.shape
    x_pooled = x if (h, w) == (dct_h, dct_w) else adaptive_avg_pool2d_ref(x, dct_h, dct_w)
    y = jnp.sum(x_pooled * dct_weight[None], axis=(2, 3))        # (N, C)
    h1 = jnp.maximum(y @ w1.T, 0.0)                              # (N, C//r)
    z = jax.nn.sigmoid(h1 @ w2.T)                                # (N, C)
    return x * z[:, :, None, None]


# --------------------------------------- main ---------------------------------------

def _run_case(key, batch, channel, H, W, dct_h, dct_w, reduction, num_freq, method):
    mapper_x, mapper_y = get_freq_indices(method, num_freq)
    mapper_x = [mx * (dct_h // 7) for mx in mapper_x]
    mapper_y = [my * (dct_w // 7) for my in mapper_y]
    dct_weight = get_dct_filter(dct_h, dct_w, mapper_x, mapper_y, channel)

    kx, k1, k2 = jax.random.split(key, 3)
    cr = channel // reduction
    w1 = (jax.random.normal(k1, (cr, channel), jnp.float32)
          * (1.0 / math.sqrt(channel)))      # Linear(channel -> channel//r), no bias
    w2 = (jax.random.normal(k2, (channel, cr), jnp.float32)
          * (1.0 / math.sqrt(cr)))           # Linear(channel//r -> channel), no bias

    x = jax.random.normal(kx, (batch, channel, H, W), jnp.float32)

    out = multi_spectral_attention(x, dct_weight, w1, w2, dct_h, dct_w)
    out = jax.block_until_ready(out)

    ref = reference(x, dct_weight, w1, w2, dct_h, dct_w)
    np.testing.assert_allclose(np.asarray(out), np.asarray(ref), rtol=1e-4, atol=1e-5)


if __name__ == "__main__":
    key = jax.random.PRNGKey(0)
    k_a, k_b = jax.random.split(key, 2)

    # Case 1: HW multiple of 128 (lane-dense default layout), tiny C (VPU FC),
    # divisible adaptive pool, odd batch -> ragged last grid block.
    _run_case(k_a, batch=3, channel=32, H=16, W=16,
              dct_h=8, dct_w=8, reduction=4, num_freq=16, method=Method.TOP)

    # Case 2: HW (=100) not a multiple of 128 but C (=128) is -> channel-last
    # layout + MXU FC; H/W not divisible by dct_h/dct_w -> exercises the
    # folded non-divisible adaptive-pool path.
    _run_case(k_b, batch=2, channel=128, H=10, W=10,
              dct_h=7, dct_w=7, reduction=8, num_freq=16, method=Method.TOP)

    print("KERNEL_OK")
</pallas_src>

<mosaic_0001>
module attributes {stable_mosaic.version = 11 : i64} {
  func.func @_msa_kernel_c_sublane(%arg0: i32, %arg1: memref<2x32x256xf32, #tpu.memory_space<vmem>>, %arg2: memref<32x256xf32, #tpu.memory_space<vmem>>, %arg3: memref<32x8xf32, #tpu.memory_space<vmem>>, %arg4: memref<8x32xf32, #tpu.memory_space<vmem>>, %arg5: memref<2x32x256xf32, #tpu.memory_space<vmem>>) attributes {dimension_semantics = [#tpu.dimension_semantics<parallel>], iteration_bounds = array<i64: 2>, scalar_prefetch = 0 : i64, scratch_operands = 0 : i64, tpu.core_type = #tpu.core_type<tc>, window_params = [{transform_indices = @transform_0, window_bounds = array<i64: 2, 32, 256>}, {pipeline_mode = #tpu.pipeline_mode<synchronous>, transform_indices = @transform_1, window_bounds = array<i64: 32, 256>}, {pipeline_mode = #tpu.pipeline_mode<synchronous>, transform_indices = @transform_2, window_bounds = array<i64: 32, 8>}, {pipeline_mode = #tpu.pipeline_mode<synchronous>, transform_indices = @transform_3, window_bounds = array<i64: 8, 32>}, {transform_indices = @transform_4, window_bounds = array<i64: 2, 32, 256>}]} {
    %c0 = arith.constant 0 : index
    %c0_0 = arith.constant 0 : index
    %c0_1 = arith.constant 0 : index
    %0 = vector.load %arg1[%c0, %c0_0, %c0_1] : memref<2x32x256xf32, #tpu.memory_space<vmem>>, vector<2x32x256xf32>
    %c0_2 = arith.constant 0 : index
    %c0_3 = arith.constant 0 : index
    %1 = vector.load %arg2[%c0_2, %c0_3] : memref<32x256xf32, #tpu.memory_space<vmem>>, vector<32x256xf32>
    %2 = vector.shape_cast %1 : vector<32x256xf32> to vector<1x32x256xf32>
    %3 = vector.broadcast %2 : vector<1x32x256xf32> to vector<2x32x256xf32>
    %4 = arith.mulf %0, %3 : vector<2x32x256xf32>
    %cst = arith.constant dense<0.000000e+00> : vector<2x32xf32>
    %5 = vector.multi_reduction <add>, %4, %cst [2] : vector<2x32x256xf32> to vector<2x32xf32>
    %c0_4 = arith.constant 0 : index
    %c0_5 = arith.constant 0 : index
    %6 = vector.load %arg3[%c0_4, %c0_5] : memref<32x8xf32, #tpu.memory_space<vmem>>, vector<32x8xf32>
    %c0_6 = arith.constant 0 : index
    %c0_7 = arith.constant 0 : index
    %7 = vector.load %arg4[%c0_6, %c0_7] : memref<8x32xf32, #tpu.memory_space<vmem>>, vector<8x32xf32>
    %8 = vector.shape_cast %5 : vector<2x32xf32> to vector<2x32x1xf32>
    %9 = vector.shape_cast %6 : vector<32x8xf32> to vector<1x32x8xf32>
    %10 = vector.broadcast %8 : vector<2x32x1xf32> to vector<2x32x8xf32>
    %11 = vector.broadcast %9 : vector<1x32x8xf32> to vector<2x32x8xf32>
    %12 = arith.mulf %10, %11 : vector<2x32x8xf32>
    %cst_8 = arith.constant dense<0.000000e+00> : vector<2x8xf32>
    %13 = vector.multi_reduction <add>, %12, %cst_8 [1] : vector<2x32x8xf32> to vector<2x8xf32>
    %cst_9 = arith.constant 0.000000e+00 : f32
    %14 = vector.broadcast %cst_9 : f32 to vector<2x8xf32>
    %15 = arith.maximumf %13, %14 : vector<2x8xf32>
    %16 = vector.shape_cast %15 : vector<2x8xf32> to vector<2x8x1xf32>
    %17 = vector.shape_cast %7 : vector<8x32xf32> to vector<1x8x32xf32>
    %18 = vector.broadcast %16 : vector<2x8x1xf32> to vector<2x8x32xf32>
    %19 = vector.broadcast %17 : vector<1x8x32xf32> to vector<2x8x32xf32>
    %20 = arith.mulf %18, %19 : vector<2x8x32xf32>
    %cst_10 = arith.constant dense<0.000000e+00> : vector<2x32xf32>
    %21 = vector.multi_reduction <add>, %20, %cst_10 [1] : vector<2x8x32xf32> to vector<2x32xf32>
    %22 = arith.negf %21 : vector<2x32xf32>
    %23 = math.exp %22 : vector<2x32xf32>
    %cst_11 = arith.constant 1.000000e+00 : f32
    %24 = vector.broadcast %cst_11 : f32 to vector<2x32xf32>
    %25 = arith.addf %24, %23 : vector<2x32xf32>
    %26 = arith.divf %24, %25 : vector<2x32xf32>
    %27 = vector.shape_cast %26 : vector<2x32xf32> to vector<2x32x1xf32>
    %28 = vector.broadcast %27 : vector<2x32x1xf32> to vector<2x32x256xf32>
    %29 = arith.mulf %0, %28 : vector<2x32x256xf32>
    %c0_12 = arith.constant 0 : index
    %c0_13 = arith.constant 0 : index
    %c0_14 = arith.constant 0 : index
    %30 = vector.load %arg5[%c0_12, %c0_13, %c0_14] : memref<2x32x256xf32, #tpu.memory_space<vmem>>, vector<2x32x256xf32>
    tpu.vector_store %arg5[%c0_12, %c0_13, %c0_14], %29 {strides = array<i32>} : memref<2x32x256xf32, #tpu.memory_space<vmem>>, vector<2x32x256xf32>,
    return
  }
  func.func @transform_0(%arg0: i32) -> (i32, i32, i32) {
    %c0_i32 = arith.constant 0 : i32
    %c0_i32_0 = arith.constant 0 : i32
    %c0_i32_1 = arith.constant 0 : i32
    return %arg0, %c0_i32, %c0_i32_0 : i32, i32, i32
  }
  func.func @transform_1(%arg0: i32) -> (i32, i32) {
    %c0_i32 = arith.constant 0 : i32
    %c0_i32_0 = arith.constant 0 : i32
    %c0_i32_1 = arith.constant 0 : i32
    return %c0_i32, %c0_i32_0 : i32, i32
  }
  func.func @transform_2(%arg0: i32) -> (i32, i32) {
    %c0_i32 = arith.constant 0 : i32
    %c0_i32_0 = arith.constant 0 : i32
    %c0_i32_1 = arith.constant 0 : i32
    return %c0_i32, %c0_i32_0 : i32, i32
  }
  func.func @transform_3(%arg0: i32) -> (i32, i32) {
    %c0_i32 = arith.constant 0 : i32
    %c0_i32_0 = arith.constant 0 : i32
    %c0_i32_1 = arith.constant 0 : i32
    return %c0_i32, %c0_i32_0 : i32, i32
  }
  func.func @transform_4(%arg0: i32) -> (i32, i32, i32) {
    %c0_i32 = arith.constant 0 : i32
    %c0_i32_0 = arith.constant 0 : i32
    %c0_i32_1 = arith.constant 0 : i32
    return %arg0, %c0_i32, %c0_i32_0 : i32, i32, i32
  }
}

</mosaic_0001>

<bundles_post_ra>
// kernel: tpu_custom_call.1
= control target key start
LH: loop header
LB: loop body
LE: loop exit
PB: predicated region body
PF: predicated region fallthrough
CT: control target
= control target key end

     0   :  { %9 = vsyncpa [#allocation3], 0  ;;  %s1177_s0 = inlined_call_operand.hbm [shape: f32[3,32,256], index: 0, kind: input, shape index: {}]   ;;  %s1178_s1 = inlined_call_operand.hbm [shape: f32[32,256], index: 1, kind: input, shape index: {}]   ;;  %s1179_s2 = inlined_call_operand.vmem [shape: f32[32,8], index: 2, kind: input, shape index: {}]   ;;  %s1180_s3 = inlined_call_operand.vmem [shape: f32[8,32], index: 3, kind: input, shape index: {}]   ;;  %s1181_s4 = inlined_call_operand.hbm [shape: f32[3,32,256], index: 4, kind: output, shape index: {}]  }
   0x1   :  { %11 = vsyncpa [#allocation3 + $0x1], 0 }
   0x2   :  { %12 = vsyncpa [#allocation6], 0 }
   0x3   :  { %13 = vsyncpa [#allocation4], 0 }
   0x4   :  { %15 = vsyncpa [#allocation4 + $0x1], 0  ;;  %s837_s15 = smov 0   ;;  %s839_s16 = smov 0  }
   0x5   :  { %s841_s17 = smov 0   ;;  %s843_s18 = smov 0  }
   0x6 LB: > { %s858_s19 = sadd.s32 4294967295, %s801_s18   ;;  %s565_s20 = sadd.s32 4294967294, %s801_s18   ;;  %s801_s18 = sphi %s843_s18, %s1201_s18   ;;  %s797_s17 = sphi %s841_s17, %s1200_s17   ;;  %s793_s16 = sphi %s839_s16, %s1199_s16   ;;  %s789_s15 = sphi %s837_s15, %s1198_s15  }
   0x7   : > { %s862_s21 = sadd.s32 1, %s801_s18   ;;  %s28_s22 = sadd.s32 1, %s797_s17 }
   0x8   : > { %s25_s23 = ssub.s32 %s801_s18, %s862_s21  ;;  %p35_p0 = scmp.ne.s32.totalorder %s797_s17, %s793_s16 }
   0x9   : > { %p26_p1 = scmp.eq.s32.totalorder %s25_s23, 0  ;;  %p36_p2 = scmp.eq.s32.totalorder %s801_s18, 0 }
   0xa   : > { %p41_p3 = scmp.ne.s32.totalorder %s793_s16, %s789_s15  ;;  %p1182_p4 = scmp.eq.s32.totalorder %s858_s19, 0 }
   0xb   : > { %s874_s24 = scalar_select %p26_p1, %s797_s17, %s28_s22  }
   0xc   : > { %p876_p5 = por %p36_p2, %p35_p0  ;;  %p882_p6 = por %p1182_p4, %p41_p3 }
   0xd   : > { %p128_p7 = scmp.eq.s32.totalorder %s858_s19, 1  ;;  %p134_p8 = scmp.eq.s32.totalorder %s565_s20, 1 }
   0xe   : > { %s1185_s25 = scalar_select %p876_p5, 1, 0 }
   0xf   : > { %s1186_s26 = scalar_select %p882_p6, 1, 0 }
  0x10   : > { %p566_p9 = scmp.ge.s32.totalorder %s801_s18, 1  ;;  %p141_p10 = scmp.lt.s32.totalorder %s801_s18, 3 }
  0x11   : > { %p889_p11 = por %p128_p7, %p35_p0  ;;  %p893_p12 = por %p134_p8, %p41_p3 }
  0x12   : > { %p897_p13 = pnand %p566_p9, %p141_p10  ;;  %s803_s30 = smov [#allocation5]  }
  0x13   : > { %s1187_s27 = scalar_select %p889_p11, 1, 0 }
  0x14   : > { %s1188_s28 = scalar_select %p893_p12, 1, 0 }
  0x15   : > { %s1189_s29 = scalar_select %p897_p13, 1, 0 }
  0x16   : > { %p617_p1 = pneg %p897_p13  ;;  %s153_s5 = sshll.u32 %s803_s30, 4  ;;  %s154_s5 = int_to_ptr.vmem [resolvable:$true] %s153_s5 }
  0x17   : > { %s675_s9 = scalar_lea.hbm %s1178_s1, 1024 }
  0x18   : > { %p905_p2 = pnand %p617_p1, %p1182_p4  ;;  %p676_p0 = scmp.ne.s32.totalorder %s1178_s1, %s675_s9 }
  0x19   : > { %p682_p9 = scmp.lt.u32.totalorder %s675_s9, %s1178_s1 }
  0x1a   : > { %p677_p3 = pneg %p905_p2 }
  0x1c   : > { %p678_p7 = pnand %p677_p3, %p676_p0 }
  0x1e   : > { %p679_p8 = pneg %p678_p7 }
  0x20   : > { %p684_p10 = pnand %p682_p9, %p679_p8 }
  0x22   : > { %687 = shalt.err (!%p684_p10)
}
  0x23   : > { %s688_s14 = scalar_lea.vmem %s154_s5, 1024  ;;  %p696_p11 = scmp.lt.s32.totalorder %s154_s5, %s154_s5 }
  0x24   : > { %p689_p1 = scmp.ne.s32.totalorder %s154_s5, %s688_s14  ;;  %p697_p6 = scmp.lt.s32.totalorder %s688_s14, %s688_s14 }
  0x26   : > { %p691_p4 = pnand %p689_p1, %p677_p3  ;;  %p698_p13 = por %p697_p6, %p696_p11 }
  0x28   : > { %p692_p12 = pneg %p691_p4 }
  0x2a   : > { %p699_p5 = pnand %p698_p13, %p692_p12 }
  0x2c   : > { %702 = shalt.err (!%p699_p5)
}
  0x2d   : > { %s804_s20 = smov 256   ;;  %s805_s22 = smov 16  }
  0x2e   : > { %620 = dma.hbm_to_vmem [thread:$0]  (!%p905_p2), %s1178_s1, 1024, %s154_s5, [#allocation6], %s804_s20, %s804_s20, %s805_s22  }
  0x2f   : > { %p568_p0 = scmp.ge.s32.totalorder %s801_s18, 2 }
  0x30   : > { %p1191_p4 = scmp.ne.s32.totalorder (!%p568_p0), %s1185_s25, 0 }
  0x31   : > { %169 = sbr.rel (%p568_p0) target bundleno = 91 (0x5b), region = 28 }
  0x38   : > { %172 = sbr.rel (!%p1191_p4) target bundleno = 91 (0x5b), region = 32  ;;  %s173_s7 = sand.u32 (%p1191_p4), 1, %s797_s17  }
  0x39   : > { %s570_s8 = sshll.u32 (%p1191_p4), %s801_s18, 1  ;;  %s569_s9 = sshll.u32 (%p1191_p4), %s173_s7, 7 }
  0x3a   : > { %s179_s10 = ssub.s32 (%p1191_p4), 3, %s570_s8  ;;  %s935_s11 = scalar_lea.sflag (%p1191_p4), [#allocation3], %s173_s7 }
  0x3b   : > { %p180_p5 = scmp.lt.s32.totalorder (%p1191_p4), %s179_s10, 2  ;;  %s177_s12 = scalar_lea.vmem (%p1191_p4), [#allocation2], %s569_s9 }
  0x3f   : > { %s1203_s10 = smov (!%p180_p5, %s179_s10), 2 }
  0x40   : > { %s932_s6 = sshll.u32 %s1203_s10, 10 }
  0x41   : > { %s186_s5 = ssub.s32 2048, %s932_s6 }
  0x42   : > { %187 = vsyncadd %s935_s11, %s186_s5  ;;  %p574_p6 = scmp.ne.s32.totalorder %s932_s6, 0  ;;  %s602_s25 = sshll.u32 %s801_s18, 11 }
  0x43   : > { %s943_s20 = scalar_lea.hbm %s1177_s0, %s602_s25  ;;  %s194_s22 = sshll.u32 %s177_s12, 4  ;;  %s945_s22 = int_to_ptr.vmem [resolvable:$true] %s194_s22 }
  0x44   : > { %s703_s23 = scalar_lea.hbm %s943_s20, %s932_s6  ;;  %s707_s8 = scalar_lea.hbm %s1177_s0, 3072 }
  0x45   : > { %p704_p11 = scmp.ne.s32.totalorder %s943_s20, %s703_s23  ;;  %p708_p2 = scmp.lt.u32.totalorder %s943_s20, %s1177_s0 }
  0x46   : > { %p709_p3 = scmp.lt.u32.totalorder %s707_s8, %s703_s23  ;;  %p711_p8 = scmp.lt.u32.totalorder %s703_s23, %s943_s20 }
  0x47   : > { %p705_p12 = pnand %p704_p11, %p574_p6 }
  0x48   : > { %p710_p7 = por %p709_p3, %p708_p2 }
  0x49   : > { %p706_p13 = pneg %p705_p12 }
  0x4a   : > { %p712_p9 = por %p711_p8, %p710_p7 }
  0x4c   : > { %p713_p10 = pnand %p712_p9, %p706_p13 }
  0x4e   : > { %716 = shalt.err (!%p713_p10)
}
  0x4f   : > { %s717_s5 = scalar_lea.vmem %s945_s22, %s932_s6  ;;  %s806_s12 = smov [#allocation2]  }
  0x50   : > { %p718_p1 = scmp.ne.s32.totalorder %s945_s22, %s717_s5  ;;  %s721_s25 = sshll.u32 %s806_s12, 4  ;;  %s722_s25 = int_to_ptr.vmem [resolvable:$false] %s721_s25 }
  0x51   : > { %s723_s13 = scalar_lea.vmem %s722_s25, 4096  ;;  %p724_p11 = scmp.lt.s32.totalorder %s945_s22, %s722_s25 }
  0x52   : > { %p719_p4 = pnand %p718_p1, %p574_p6  ;;  %p725_p12 = scmp.lt.s32.totalorder %s723_s13, %s717_s5 }
  0x54   : > { %p720_p5 = pneg %p719_p4  ;;  %p726_p2 = por %p725_p12, %p724_p11 }
  0x56   : > { %p727_p3 = pnand %p726_p2, %p720_p5 }
  0x58   : > { %730 = shalt.err (!%p727_p3)
}
  0x59   : > { %s807_s14 = smov 256   ;;  %s808_s23 = smov 16  }
  0x5a   : > { %200 = dma.hbm_to_vmem [thread:$0]  (%p574_p6), %s943_s20, %s932_s6, %s945_s22, %s935_s11, %s807_s14, %s807_s14, %s808_s23  }
  0x5b PF: > { %p1192_p13 = scmp.ne.s32.totalorder %s1189_s29, 0 }
  0x5c   : > { %s975_s30 = sand.u32 (!%p1192_p13), 1, %s793_s16   ;;  %p1193_p7 = scmp.ne.s32.totalorder (!%p1192_p13), %s1186_s26, 0 }
  0x5d   : > { %206 = sbr.rel (%p1192_p13) target bundleno = 602 (0x25a), region = 36  ;;  %s581_s7 = sshll.u32 (!%p1192_p13), %s975_s30, 7 }
  0x5e   : > { %s209_s8 = scalar_lea.sflag (!%p1192_p13), [#allocation3], %s975_s30  ;;  %s981_s9 = scalar_lea.vmem (!%p1192_p13), [#allocation2], %s581_s7 }
  0x64   : > { %776 = dma.done.wait (%p1193_p7), %s209_s8, 2048  }
  0x65   : > { %778 = vsyncadd (%p1193_p7), %s209_s8, 4294965248  ;;  %p1194_p6 = scmp.eq.s32.totalorder %s858_s19, 0 }
  0x67   : > { %780 = dma.done.wait (%p1194_p6), [#allocation6], 1024   ;;  %p1195_p8 = pmov %p1194_p6 }
  0x68   : > { %v992_v0 = vld [vmem:[%s981_s9 + $0x40] sm:$0xff]  ;;  %v995_v1 = vld [vmem:[%s981_s9 + $0x48] sm:$0xff]  ;;  %v1008_v10 = vld [vmem:[%s981_s9 + $0x50] sm:$0xff]  ;;  %vm332_vm0 = vcmask 64512   ;;  %vm369_vm1 = vcmask 261120   ;;  %s1084_s13 = scalar_lea.vmem [#allocation7], %s581_s7 }
  0x69   : > { %782 = vsyncadd (%p1195_p8), [#allocation6], 4294966272  ;;  %v271_v2 = vld [vmem:[#allocation5] sm:$0xff]  ;;  %v272_v3 = vld [vmem:[#allocation5 + $0x8] sm:$0xff]  ;;  %s459_s14 = scalar_lea.sflag [#allocation4], %s975_s30  ;;  %p1196_p9 = scmp.ne.s32.totalorder %s1187_s27, 0 }
  0x6a   : > { %v287_v4 = vmul.f32 %v271_v2, %v992_v0  ;;  %v999_v5 = vld [vmem:[%s981_s9] sm:$0xff]  ;;  %v1002_v6 = vld [vmem:[%s981_s9 + $0x8] sm:$0xff]  ;;  %v288_v7 = vmul.f32 %v272_v3, %v995_v1  ;;  %v1011_v11 = vld [vmem:[%s981_s9 + $0x58] sm:$0xff]  ;;  %s587_s23 = sshll.u32 (%p1196_p9), %s858_s19, 1 }
  0x6b   : > { %v279_v8 = vmul.f32 %v271_v2, %v999_v5  ;;  %v280_v9 = vmul.f32 %v272_v3, %v1002_v6  ;;  %v273_v12 = vld [vmem:[#allocation5 + $0x10] sm:$0xff]  ;;  %v274_v13 = vld [vmem:[#allocation5 + $0x18] sm:$0xff]  ;;  %v1023_v21 = vld [vmem:[%s981_s9 + $0x60] sm:$0xff]  ;;  %s467_s7 = ssub.s32 (%p1196_p9), 3, %s587_s23 }
  0x6c   : > { %v289_v14 = vmul.f32 %v273_v12, %v1008_v10  ;;  %v1015_v15 = vld [vmem:[%s981_s9 + $0x10] sm:$0xff]  ;;  %v1018_v16 = vld [vmem:[%s981_s9 + $0x18] sm:$0xff]  ;;  %v307_v17 = vadd.f32 %v288_v7, %v287_v4  ;;  %v290_v19 = vmul.f32 %v274_v13, %v1011_v11  ;;  %v1026_v22 = vld [vmem:[%s981_s9 + $0x68] sm:$0xff]  ;;  %p468_p10 = scmp.lt.s32.totalorder (%p1196_p9), %s467_s7, 2 }
  0x6d   : > { %v295_v18 = vadd.f32 %v280_v9, %v279_v8  ;;  %v281_v20 = vmul.f32 %v273_v12, %v1015_v15  ;;  %v275_v23 = vld [vmem:[#allocation5 + $0x20] sm:$0xff]  ;;  %v282_v24 = vmul.f32 %v274_v13, %v1018_v16  ;;  %v276_v25 = vld [vmem:[#allocation5 + $0x28] sm:$0xff]  ;;  %v1039_v32 = vld [vmem:[%s981_s9 + $0x70] sm:$0xff] }
  0x6e   : > { %v291_v26 = vmul.f32 %v275_v23, %v1023_v21  ;;  %v1031_v27 = vld [vmem:[%s981_s9 + $0x20] sm:$0xff]  ;;  %v1034_v28 = vld [vmem:[%s981_s9 + $0x28] sm:$0xff]  ;;  %308 = vadd.xlane.f32.xlu1 %v307_v17  ;;  %v310_v29 = vadd.f32 %v290_v19, %v289_v14  ;;  %v292_v30 = vmul.f32 %v276_v25, %v1026_v22  ;;  %v1042_v33 = vld [vmem:[%s981_s9 + $0x78] sm:$0xff] }
  0x6f   : > { %296 = vadd.xlane.f32.xlu0 %v295_v18  ;;  %v283_v31 = vmul.f32 %v275_v23, %v1031_v27  ;;  %v277_v34 = vld [vmem:[#allocation5 + $0x30] sm:$0xff]  ;;  %v298_v35 = vadd.f32 %v282_v24, %v281_v20  ;;  %v284_v36 = vmul.f32 %v276_v25, %v1034_v28  ;;  %v278_v37 = vld [vmem:[#allocation5 + $0x38] sm:$0xff]  ;;  %v319_v48 = vld [vmem:[%s1179_s2] sm:$0xff] }
  0x70   : > { %v1046_v38 = vld [vmem:[%s981_s9 + $0x30] sm:$0xff]  ;;  %v1049_v39 = vld [vmem:[%s981_s9 + $0x38] sm:$0xff]  ;;  %v313_v40 = vadd.f32 %v292_v30, %v291_v26  ;;  %v293_v41 = vmul.f32 %v277_v34, %v1039_v32  ;;  %v294_v42 = vmul.f32 %v278_v37, %v1042_v33  ;;  %v320_v52 = vld [vmem:[%s1179_s2 + $0x8] sm:$0xff] }
  0x71   : > { %v301_v43 = vadd.f32 %v284_v36, %v283_v31  ;;  %v285_v44 = vmul.f32 %v277_v34, %v1046_v38  ;;  %v286_v45 = vmul.f32 %v278_v37, %v1049_v39  ;;  %v321_v58 = vld [vmem:[%s1179_s2 + $0x10] sm:$0xff]  ;;  %v322_v7 = vld [vmem:[%s1179_s2 + $0x18] sm:$0xff] }
  0x72   : > { %311 = vadd.xlane.f32.xlu1 %v310_v29  ;;  %v316_v46 = vadd.f32 %v294_v42, %v293_v41 }
  0x73   : > { %299 = vadd.xlane.f32.xlu0 %v298_v35  ;;  %v304_v47 = vadd.f32 %v286_v45, %v285_v44 }
  0x76   : > { %314 = vadd.xlane.f32.xlu1 %v313_v40 }
  0x77   : > { %302 = vadd.xlane.f32.xlu0 %v301_v43 }
  0x7a   : > { %317 = vadd.xlane.f32.xlu1 %v316_v46 }
  0x7b   : > { %305 = vadd.xlane.f32.xlu0 %v304_v47 }
  0xfb   : > { %v309_v49 = vpop.xlane.xlu1 %308 }
  0xfc   : > { %v297_v50 = vpop.xlane.xlu0 %296  ;;  %v328_v51 = vmul.f32 %v319_v48, %v309_v49 }
  0xfd   : > { %v324_v59 = vmul.f32 %v319_v48, %v297_v50  ;;  %v323_v48 = vld [vmem:[%s1180_s3] sm:$0xff] }
  0xfe   : > { %v346_v55 = vsel %vm332_vm0, %v328_v51, 0.0 }
  0xff   : > { %v312_v53 = vpop.xlane.xlu1 %311  ;;  %v333_v8 = vsel %vm332_vm0, %v324_v59, 0.0 }
 0x100   : > { %v300_v54 = vpop.xlane.xlu0 %299  ;;  %v329_v56 = vmul.f32 %v320_v52, %v312_v53 }
 0x101   : > { %v325_v57 = vmul.f32 %v320_v52, %v300_v54 }
 0x102   : > { %v347_v60 = vsel %vm332_vm0, %v329_v56, 0.0 }
 0x103   : > { %v348_v61 = vadd.f32 %v347_v60, %v346_v55  ;;  %v315_v62 = vpop.xlane.xlu1 %314  ;;  %v334_v2 = vsel %vm332_vm0, %v325_v57, 0.0 }
 0x104   : > { %v303_v63 = vpop.xlane.xlu0 %302  ;;  %v330_v3 = vmul.f32 %v321_v58, %v315_v62  ;;  %v335_v13 = vadd.f32 %v334_v2, %v333_v8 }
 0x105   : > { %v326_v4 = vmul.f32 %v321_v58, %v303_v63 }
 0x106   : > { %v349_v9 = vsel %vm332_vm0, %v330_v3, 0.0 }
 0x107   : > { %v336_v12 = vsel %vm332_vm0, %v326_v4, 0.0  ;;  %v350_v14 = vadd.f32 %v349_v9, %v348_v61  ;;  %v318_v17 = vpop.xlane.xlu1 %317 }
 0x108   : > { %v306_v18 = vpop.xlane.xlu0 %305  ;;  %v331_v19 = vmul.f32 %v322_v7, %v318_v17  ;;  %v337_v23 = vadd.f32 %v336_v12, %v335_v13 }
 0x109   : > { %v327_v20 = vmul.f32 %v322_v7, %v306_v18 }
 0x10a   : > { %v351_v24 = vsel %vm332_vm0, %v331_v19, 0.0 }
 0x10b   : > { %v338_v25 = vsel %vm332_vm0, %v327_v20, 0.0  ;;  %v352_v26 = vadd.f32 %v351_v24, %v350_v14 }
 0x10c   : > { %v339_v29 = vadd.f32 %v338_v25, %v337_v23 }
 0x10d   : > { %v353_v30 = vrot.slane %v352_v26, 4 }
 0x10e   : > { %v340_v31 = vrot.slane %v339_v29, 4 }
 0x10f   : > { %v354_v34 = vadd.f32 %v353_v30, %v352_v26 }
 0x110   : > { %v341_v35 = vadd.f32 %v340_v31, %v339_v29 }
 0x111   : > { %v355_v36 = vrot.slane %v354_v34, 2 }
 0x112   : > { %v342_v37 = vrot.slane %v341_v35, 2 }
 0x113   : > { %v356_v40 = vadd.f32 %v355_v36, %v354_v34 }
 0x114   : > { %v343_v41 = vadd.f32 %v342_v37, %v341_v35 }
 0x115   : > { %v357_v42 = vrot.slane %v356_v40, 1 }
 0x116   : > { %v344_v43 = vrot.slane %v343_v41, 1 }
 0x117   : > { %v358_v44 = vadd.f32 %v357_v42, %v356_v40 }
 0x118   : > { %v345_v45 = vadd.f32 %v344_v43, %v343_v41 }
 0x119   : > { %v360_v46 = vmax.f32 %v358_v44, 0.0 }
 0x11a   : > { %v359_v47 = vmax.f32 %v345_v45, 0.0 }
 0x11b   : > { %365 = vbcast.lane.b32.xlu1 %v360_v46, 256 }
 0x11c   : > { %362 = vbcast.lane.b32.xlu0 %v359_v47, 256 }
 0x18d   : > { %v366_v49 = vpop.permute.xlu1 %365 }
 0x18e   : > { %v363_v50 = vpop.permute.xlu0 %362  ;;  %v368_v51 = vmul.f32 %v366_v49, %v323_v48 }
 0x18f   : > { %v367_v52 = vmul.f32 %v363_v50, %v323_v48 }
 0x190   : > { %v377_v53 = vsel %vm369_vm1, %v368_v51, 0.0 }
 0x191   : > { %v370_v54 = vsel %vm369_vm1, %v367_v52, 0.0  ;;  %v378_v55 = vrot.slane %v377_v53, 4 }
 0x192   : > { %v371_v56 = vrot.slane %v370_v54, 4 }
 0x193   : > { %v379_v57 = vadd.f32 %v378_v55, %v377_v53 }
 0x194   : > { %v372_v58 = vadd.f32 %v371_v56, %v370_v54 }
 0x195   : > { %v380_v59 = vrot.slane %v379_v57, 2 }
 0x196   : > { %v373_v60 = vrot.slane %v372_v58, 2 }
 0x197   : > { %v381_v61 = vadd.f32 %v380_v59, %v379_v57 }
 0x198   : > { %v374_v62 = vadd.f32 %v373_v60, %v372_v58 }
 0x199   : > { %v382_v63 = vrot.slane %v381_v61, 1 }
 0x19a   : > { %v375_v2 = vrot.slane %v374_v62, 1 }
 0x19b   : > { %v383_v3 = vadd.f32 %v382_v63, %v381_v61 }
 0x19c   : > { %v376_v4 = vadd.f32 %v375_v2, %v374_v62 }
 0x19d   : > { %v585_v7 = vmul.f32 -1.442695, %v383_v3 }
 0x19e   : > { %v584_v8 = vmul.f32 -1.442695, %v376_v4 }
 0x19f   : > { %667 = vpow2.f32 %v585_v7 }
 0x1a0   : > { %669 = vpow2.f32 %v584_v8 }
 0x1a9   : > { %v668_v9 = vpop.eup %667 }
 0x1aa   : > { %v670_v12 = vpop.eup %669  ;;  %v391_v14 = vadd.f32 1.0, %v668_v9 }
 0x1ab   : > { %v390_v13 = vadd.f32 1.0, %v670_v12 }
 0x1ad   : > { %671 = vrcp.f32 %v390_v13 }
 0x1ae   : > { %673 = vrcp.f32 %v391_v14 }
 0x1b7   : > { %v672_v17 = vpop.eup %671 }
 0x1b8   : > { %405 = vbcast.lane.b32.xlu0 %v672_v17, 272  ;;  %397 = vbcast.lane.b32.xlu1 %v672_v17, 256  ;;  %v674_v18 = vpop.eup %673 }
 0x1bc   : > { %412 = vbcast.lane.b32.xlu0 %v674_v18, 256  ;;  %401 = vbcast.lane.b32.xlu1 %v672_v17, 264 }
 0x1c0   : > { %420 = vbcast.lane.b32.xlu0 %v674_v18, 272  ;;  %409 = vbcast.lane.b32.xlu1 %v672_v17, 280 }
 0x1c4   : > { %416 = vbcast.lane.b32.xlu1 %v674_v18, 264 }
 0x1c8   : > { %424 = vbcast.lane.b32.xlu1 %v674_v18, 280 }
 0x22a   : > { %v406_v19 = vpop.permute.xlu0 %405  ;;  %v398_v20 = vpop.permute.xlu1 %397 }
 0x22b   : > { %v430_v23 = vmul.f32 %v406_v19, %v1031_v27  ;;  %v431_v24 = vmul.f32 %v406_v19, %v1034_v28  ;;  %v426_v25 = vmul.f32 %v398_v20, %v999_v5  ;;  %v427_v26 = vmul.f32 %v398_v20, %v1002_v6 }
 0x22d   : > { %446 = vst [vmem:[%s1084_s13 + $0x20] sm:$0xff] %v430_v23  ;;  %447 = vst [vmem:[%s1084_s13 + $0x28] sm:$0xff] %v431_v24 }
 0x22e   : > { %442 = vst [vmem:[%s1084_s13] sm:$0xff] %v426_v25  ;;  %443 = vst [vmem:[%s1084_s13 + $0x8] sm:$0xff] %v427_v26  ;;  %v413_v27 = vpop.permute.xlu0 %412  ;;  %v402_v5 = vpop.permute.xlu1 %401 }
 0x22f   : > { %v434_v6 = vmul.f32 %v413_v27, %v992_v0  ;;  %v435_v28 = vmul.f32 %v413_v27, %v995_v1  ;;  %v428_v29 = vmul.f32 %v402_v5, %v1015_v15  ;;  %v429_v30 = vmul.f32 %v402_v5, %v1018_v16 }
 0x231   : > { %450 = vst [vmem:[%s1084_s13 + $0x40] sm:$0xff] %v434_v6  ;;  %451 = vst [vmem:[%s1084_s13 + $0x48] sm:$0xff] %v435_v28 }
 0x232   : > { %444 = vst [vmem:[%s1084_s13 + $0x10] sm:$0xff] %v428_v29  ;;  %445 = vst [vmem:[%s1084_s13 + $0x18] sm:$0xff] %v429_v30  ;;  %v421_v31 = vpop.permute.xlu0 %420  ;;  %v410_v34 = vpop.permute.xlu1 %409 }
 0x233   : > { %v438_v35 = vmul.f32 %v421_v31, %v1023_v21  ;;  %v439_v0 = vmul.f32 %v421_v31, %v1026_v22  ;;  %v432_v1 = vmul.f32 %v410_v34, %v1046_v38  ;;  %v433_v15 = vmul.f32 %v410_v34, %v1049_v39 }
 0x235   : > { %454 = vst [vmem:[%s1084_s13 + $0x60] sm:$0xff] %v438_v35  ;;  %455 = vst [vmem:[%s1084_s13 + $0x68] sm:$0xff] %v439_v0 }
 0x236   : > { %448 = vst [vmem:[%s1084_s13 + $0x30] sm:$0xff] %v432_v1  ;;  %449 = vst [vmem:[%s1084_s13 + $0x38] sm:$0xff] %v433_v15  ;;  %v417_v16 = vpop.permute.xlu1 %416 }
 0x237   : > { %v436_v36 = vmul.f32 %v417_v16, %v1008_v10  ;;  %v437_v37 = vmul.f32 %v417_v16, %v1011_v11  ;;  %465 = sbr.rel (!%p1196_p9) target bundleno = 602 (0x25a), region = 48 }
 0x239   : > { %452 = vst [vmem:[%s1084_s13 + $0x50] sm:$0xff] %v436_v36  ;;  %453 = vst [vmem:[%s1084_s13 + $0x58] sm:$0xff] %v437_v37 }
 0x23a   : > { %v425_v21 = vpop.permute.xlu1 %424 }
 0x23b   : > { %v440_v22 = vmul.f32 %v425_v21, %v1039_v32  ;;  %v441_v40 = vmul.f32 %v425_v21, %v1042_v33 }
 0x23d   : > { %456 = vst [vmem:[%s1084_s13 + $0x70] sm:$0xff] %v440_v22  ;;  %457 = vst [vmem:[%s1084_s13 + $0x78] sm:$0xff] %v441_v40 }
 0x23e   : > { %s1205_s7 = smov (!%p468_p10, %s467_s7), 2 }
 0x23f   : > { %s1118_s8 = sshll.u32 %s1205_s7, 10 }
 0x240   : > { %s474_s9 = ssub.s32 2048, %s1118_s8 }
 0x241   : > { %475 = vsyncadd %s459_s14, %s474_s9  ;;  %p591_p1 = scmp.ne.s32.totalorder %s1118_s8, 0  ;;  %s608_s27 = sshll.u32 %s858_s19, 11 }
 0x242   : > { %s1128_s6 = scalar_lea.hbm %s1181_s4, %s608_s27  ;;  %s482_s11 = sshll.u32 %s1084_s13, 4  ;;  %s1131_s11 = int_to_ptr.vmem [resolvable:$true] %s482_s11 }
 0x243   : > { %s731_s20 = scalar_lea.vmem %s1131_s11, %s1118_s8  ;;  %s809_s22 = smov [#allocation7]  }
 0x244   : > { %p732_p4 = scmp.ne.s32.totalorder %s1131_s11, %s731_s20  ;;  %s735_s10 = sshll.u32 %s809_s22, 4  ;;  %s736_s10 = int_to_ptr.vmem [resolvable:$false] %s735_s10 }
 0x245   : > { %s737_s19 = scalar_lea.vmem %s736_s10, 4096  ;;  %p738_p12 = scmp.lt.s32.totalorder %s1131_s11, %s736_s10 }
 0x246   : > { %p733_p5 = pnand %p732_p4, %p591_p1  ;;  %p739_p2 = scmp.lt.s32.totalorder %s737_s19, %s731_s20 }
 0x248   : > { %p734_p11 = pneg %p733_p5  ;;  %p740_p3 = por %p739_p2, %p738_p12 }
 0x24a   : > { %p741_p13 = pnand %p740_p3, %p734_p11 }
 0x24c   : > { %744 = shalt.err (!%p741_p13)
}
 0x24d   : > { %s745_s5 = scalar_lea.hbm %s1128_s6, %s1118_s8  ;;  %s749_s13 = scalar_lea.hbm %s1181_s4, 3072 }
 0x24e   : > { %p746_p7 = scmp.ne.s32.totalorder %s1128_s6, %s745_s5  ;;  %p750_p9 = scmp.lt.u32.totalorder %s1128_s6, %s1181_s4 }
 0x24f   : > { %p751_p10 = scmp.lt.u32.totalorder %s749_s13, %s745_s5  ;;  %p753_p5 = scmp.lt.u32.totalorder %s745_s5, %s1128_s6 }
 0x250   : > { %p747_p6 = pnand %p746_p7, %p591_p1 }
 0x251   : > { %p752_p4 = por %p751_p10, %p750_p9 }
 0x252   : > { %p748_p8 = pneg %p747_p6 }
 0x253   : > { %p754_p11 = por %p753_p5, %p752_p4 }
 0x255   : > { %p755_p12 = pnand %p754_p11, %p748_p8 }
 0x257   : > { %758 = shalt.err (!%p755_p12)
}
 0x258   : > { %s810_s9 = smov 256   ;;  %s811_s27 = smov 16  }
 0x259   : > { %488 = dma.vmem_to_hbm [thread:$0]  (%p591_p1), %s1131_s11, %s1118_s8, %s1128_s6, %s459_s14, %s810_s9, %s810_s9, %s811_s27  }
 0x25a PF: > { %s497_s26 = sand.u32 1, %s789_s15   ;;  %p1197_p2 = scmp.ne.s32.totalorder %s1188_s28, 0 }
 0x25b   : > { %s498_s29 = scalar_lea.sflag [#allocation4], %s497_s26 }
 0x25c   : > { %p622_p3 = pnand %p568_p0, %p1197_p2 }
 0x25e   : > { %784 = dma.done.wait (!%p622_p3), %s498_s29, 2048  }
 0x25f   : > { %786 = vsyncadd (!%p622_p3), %s498_s29, 4294965248  ;;  %p18_p13 = scmp.ge.s32.totalorder %s862_s21, 4   ;;  %s1198_s15 = smov %s793_s16 }
 0x260   : > { %s1199_s16 = smov %s797_s17  ;;  %s1200_s17 = smov %s874_s24 }
 0x261   : > { %s1201_s18 = smov %s862_s21  ;;  %20 = sbr.rel (!%p18_p13) target bundleno = 6 (0x6), region = 85 }
 0x268   :  { %503 = vsyncpa [#allocation3], 1 }
 0x269   :  { %505 = vsyncpa [#allocation3 + $0x1], 1 }
 0x26a   :  { %506 = vsyncpa [#allocation6], 1 }
 0x26b   :  { %507 = vsyncpa [#allocation4], 1 }
 0x26c   :  { %509 = vsyncpa [#allocation4 + $0x1], 1 }

</bundles_post_ra>
